<compile_context>
chip_gen: v7x
topology: tpu7x:2x2x1
jax: 0.10.0
libtpu: 0.0.40
codegen_flags: <defaults>
</compile_context>

<pallas_src>
import jax
import jax.numpy as jnp
from jax.experimental import pallas as pl
from jax.experimental.pallas import tpu as pltpu


TILE_B = 16384          # batch tile on the lane axis (multiple of 128); sweepable
PALLAS_MIN_BATCH = 4096  # below this, the XLA-fused reference path wins


def _dqn_kernel(x_ref, w1_ref, b1_ref, w2_ref, b2_ref, w3_ref, b3_ref, o_ref):
    # x_ref: (n_inputs, tb) bf16 ; w*_ref: transposed weights (out, in) bf16
    # b*_ref: (out, 1) f32 ; o_ref: (5, tb) out_dtype
    x = x_ref[...]
    # f32 bias-add/ReLU epilogue (closest to torch numerics; safe on v5e which has
    # no bf16 VALU).  On v7x a bf16 epilogue would shave ~10-20% VALU pressure.
    h1 = jnp.dot(w1_ref[...], x, preferred_element_type=jnp.float32) + b1_ref[...]
    h1 = jnp.maximum(h1, 0.0).astype(jnp.bfloat16)
    h2 = jnp.dot(w2_ref[...], h1, preferred_element_type=jnp.float32) + b2_ref[...]
    h2 = jnp.maximum(h2, 0.0).astype(jnp.bfloat16)
    y = jnp.dot(w3_ref[...], h2, preferred_element_type=jnp.float32) + b3_ref[...]
    o_ref[...] = y.astype(o_ref.dtype)


def _round_up(n, m):
    return (n + m - 1) // m * m


def _choose_tile(batch, tile_b):
    # >= 4 grid steps (2 per TC on v7x megacore) while keeping tiles large enough
    # to amortize per-step pipeline overhead; always a multiple of 128 lanes.
    quarter = _round_up(pl.cdiv(batch, 4), 128)
    return max(128, min(tile_b, quarter))


def _prep_params(params):
    return (params["w1"].T.astype(jnp.bfloat16),   # (14, n_in)
            params["b1"].reshape(-1, 1).astype(jnp.float32),
            params["w2"].T.astype(jnp.bfloat16),   # (8, 14)
            params["b2"].reshape(-1, 1).astype(jnp.float32),
            params["w3"].T.astype(jnp.bfloat16),   # (5, 8)
            params["b3"].reshape(-1, 1).astype(jnp.float32))


def dqn_forward_pallas_t(x_t, params, *, tile_b=TILE_B, out_dtype=jnp.float32):
    """Zero-relayout entry point.

    x_t: (n_inputs, B) batch-on-lanes layout (ideally already bf16 from the
    replay buffer / data loader).  Returns (5, B) Q-values in `out_dtype`.
    """
    n_in, B = x_t.shape
    x_t = x_t.astype(jnp.bfloat16)        # no-op if the producer already stores bf16
    w1t, b1, w2t, b2, w3t, b3 = _prep_params(params)

    tb = _choose_tile(B, tile_b)
    const = lambda arr: pl.BlockSpec(arr.shape, lambda i: (0, 0))

    return pl.pallas_call(
        _dqn_kernel,
        out_shape=jax.ShapeDtypeStruct((5, B), out_dtype),
        grid=(pl.cdiv(B, tb),),            # partial boundary block handled by Pallas
        in_specs=[
            # x tile marches over the batch; if xprof shows exposed DMA, add
            # pipeline_mode=pl.Buffered(3) here.
            pl.BlockSpec((n_in, tb), lambda i: (0, i)),
            const(w1t), const(b1),         # weights/biases stay VMEM-resident
            const(w2t), const(b2),
            const(w3t), const(b3),
        ],
        out_specs=pl.BlockSpec((5, tb), lambda i: (0, i)),
        compiler_params=pltpu.CompilerParams(
            dimension_semantics=("parallel",)),   # megacore sharding on v7x
    )(x_t, w1t, b1, w2t, b2, w3t, b3)


def dqn_forward_pallas(x2d, params, *, tile_b=TILE_B, out_dtype=jnp.float32):
    """Torch-layout wrapper: x2d (B, n_inputs) f32 -> (B, 5).

    NOTE: the transpose+cast below is one extra HBM pass over x; for peak
    throughput store the batch upstream as (n_inputs, B) bf16 and call
    dqn_forward_pallas_t directly.
    """
    out_t = dqn_forward_pallas_t(x2d.T.astype(jnp.bfloat16), params,
                                 tile_b=tile_b, out_dtype=out_dtype)
    return out_t.T


def dqn_forward(t, params, use_pallas=None):
    """t: (B, ...) like the torch module; flattens from dim 1 and runs the MLP."""
    B = t.shape[0]
    x = t.reshape(B, -1)
    if use_pallas is None:
        use_pallas = B >= PALLAS_MIN_BATCH  # mid-size batches: fused HLO beats launch cost
    if not use_pallas:
        return reference_forward(x, params)
    return dqn_forward_pallas(x, params)


def init_dqn_params(key, n_inputs):
    """Deterministic init mimicking torch.nn.Linear default (uniform +-1/sqrt(fan_in))."""
    dims = [(n_inputs, 14), (14, 8), (8, 5)]
    params = {}
    for i, (fan_in, fan_out) in enumerate(dims, start=1):
        key, kw, kb = jax.random.split(key, 3)
        bound = 1.0 / jnp.sqrt(float(fan_in))
        params[f"w{i}"] = jax.random.uniform(
            kw, (fan_in, fan_out), jnp.float32, -bound, bound)
        params[f"b{i}"] = jax.random.uniform(
            kb, (1, fan_out), jnp.float32, -bound, bound)
    return params


def reference_forward(x, params):
    """Pure-f32 reference (and the small-batch fast path)."""
    h1 = jnp.maximum(x @ params["w1"] + params["b1"], 0.0)
    h2 = jnp.maximum(h1 @ params["w2"] + params["b2"], 0.0)
    return h2 @ params["w3"] + params["b3"]


def reference_forward_bf16(x, params):
    """Reference mirroring the kernel's bf16-input / f32-accumulate numerics."""
    f = lambda a: a.astype(jnp.bfloat16)
    h1 = jnp.dot(f(x), f(params["w1"]), preferred_element_type=jnp.float32) + params["b1"]
    h1 = jnp.maximum(h1, 0.0)
    h2 = jnp.dot(f(h1), f(params["w2"]), preferred_element_type=jnp.float32) + params["b2"]
    h2 = jnp.maximum(h2, 0.0)
    return jnp.dot(f(h2), f(params["w3"]), preferred_element_type=jnp.float32) + params["b3"]


if __name__ == "__main__":
    key = jax.random.PRNGKey(0)
    k_small, k_large, k_rag, k_param = jax.random.split(key, 4)

    # shapes consistent with the module: (B, C, H, W) -> flatten(start_dim=1)
    B_s, C, H, W = 2, 4, 2, 2
    n_inputs = C * H * W
    params = init_dqn_params(k_param, n_inputs)

    # 1) tiny inference-style batch -> dispatcher uses the plain-JAX fast path
    t_small = jax.random.normal(k_small, (B_s, C, H, W), jnp.float32)
    out_small = jax.block_until_ready(dqn_forward(t_small, params))
    ref_small = reference_forward(t_small.reshape(B_s, -1), params)
    assert out_small.shape == (B_s, 5), out_small.shape
    assert jnp.allclose(out_small, ref_small, atol=1e-5, rtol=1e-5), "small-path mismatch"

    # 2) training-style batch -> batch-tiled Pallas kernel (grid of 4 tiles)
    B_l = 4096
    t_large = jax.random.normal(k_large, (B_l, C, H, W), jnp.float32)
    out_large = jax.block_until_ready(dqn_forward(t_large, params))
    ref_large = reference_forward_bf16(t_large.reshape(B_l, -1), params)
    assert out_large.shape == (B_l, 5), out_large.shape
    assert jnp.allclose(out_large, ref_large, atol=1e-2, rtol=1e-2), (
        "pallas-path mismatch, max abs err = "
        + str(float(jnp.max(jnp.abs(out_large - ref_large)))))

    # 3) zero-relayout entry point with a ragged (non-128-multiple) batch:
    #    exercises the cdiv grid's masked boundary block.
    B_r = 3000
    x_r = jax.random.normal(k_rag, (B_r, n_inputs), jnp.float32)
    x_rt = x_r.T.astype(jnp.bfloat16)   # stand-in for an upstream (n_in, B) bf16 buffer
    out_rt = jax.block_until_ready(dqn_forward_pallas_t(x_rt, params))
    ref_rt = reference_forward_bf16(x_r, params).T
    assert out_rt.shape == (5, B_r), out_rt.shape
    assert jnp.allclose(out_rt, ref_rt, atol=1e-2, rtol=1e-2), (
        "transposed-path mismatch, max abs err = "
        + str(float(jnp.max(jnp.abs(out_rt - ref_rt)))))

    print("KERNEL_OK")
</pallas_src>

<mosaic_0001>
module attributes {stable_mosaic.version = 11 : i64} {
  func.func @_dqn_kernel(%arg0: i32, %arg1: memref<16x1024xbf16, #tpu.memory_space<vmem>>, %arg2: memref<14x16xbf16, #tpu.memory_space<vmem>>, %arg3: memref<14x1xf32, #tpu.memory_space<vmem>>, %arg4: memref<8x14xbf16, #tpu.memory_space<vmem>>, %arg5: memref<8x1xf32, #tpu.memory_space<vmem>>, %arg6: memref<5x8xbf16, #tpu.memory_space<vmem>>, %arg7: memref<5x1xf32, #tpu.memory_space<vmem>>, %arg8: memref<5x1024xf32, #tpu.memory_space<vmem>>) attributes {dimension_semantics = [#tpu.dimension_semantics<parallel>], iteration_bounds = array<i64: 4>, scalar_prefetch = 0 : i64, scratch_operands = 0 : i64, tpu.core_type = #tpu.core_type<tc>, window_params = [{transform_indices = @transform_0, window_bounds = array<i64: 16, 1024>}, {pipeline_mode = #tpu.pipeline_mode<synchronous>, transform_indices = @transform_1, window_bounds = array<i64: 14, 16>}, {pipeline_mode = #tpu.pipeline_mode<synchronous>, transform_indices = @transform_2, window_bounds = array<i64: 14, 1>}, {pipeline_mode = #tpu.pipeline_mode<synchronous>, transform_indices = @transform_3, window_bounds = array<i64: 8, 14>}, {pipeline_mode = #tpu.pipeline_mode<synchronous>, transform_indices = @transform_4, window_bounds = array<i64: 8, 1>}, {pipeline_mode = #tpu.pipeline_mode<synchronous>, transform_indices = @transform_5, window_bounds = array<i64: 5, 8>}, {pipeline_mode = #tpu.pipeline_mode<synchronous>, transform_indices = @transform_6, window_bounds = array<i64: 5, 1>}, {transform_indices = @transform_7, window_bounds = array<i64: 5, 1024>}]} {
    %c0 = arith.constant 0 : index
    %c0_0 = arith.constant 0 : index
    %0 = vector.load %arg1[%c0, %c0_0] : memref<16x1024xbf16, #tpu.memory_space<vmem>>, vector<16x1024xbf16>
    %c0_1 = arith.constant 0 : index
    %c0_2 = arith.constant 0 : index
    %1 = vector.load %arg2[%c0_1, %c0_2] : memref<14x16xbf16, #tpu.memory_space<vmem>>, vector<14x16xbf16>
    %cst = arith.constant dense<0.000000e+00> : vector<14x1024xf32>
    %2 = tpu.matmul %1, %0, %cst {dimension_numbers = #tpu.dot_dimension_numbers<[1], [0], [0], [1], [0, 0, 1, 1], [], []>} : vector<14x16xbf16>, vector<16x1024xbf16>, vector<14x1024xf32> -> vector<14x1024xf32>
    %c0_3 = arith.constant 0 : index
    %c0_4 = arith.constant 0 : index
    %3 = vector.load %arg3[%c0_3, %c0_4] : memref<14x1xf32, #tpu.memory_space<vmem>>, vector<14x1xf32>
    %4 = vector.broadcast %3 : vector<14x1xf32> to vector<14x1024xf32>
    %5 = arith.addf %2, %4 : vector<14x1024xf32>
    %cst_5 = arith.constant 0.000000e+00 : f32
    %6 = vector.broadcast %cst_5 : f32 to vector<14x1024xf32>
    %7 = arith.maximumf %5, %6 : vector<14x1024xf32>
    %8 = arith.truncf %7 : vector<14x1024xf32> to vector<14x1024xbf16>
    %c0_6 = arith.constant 0 : index
    %c0_7 = arith.constant 0 : index
    %9 = vector.load %arg4[%c0_6, %c0_7] : memref<8x14xbf16, #tpu.memory_space<vmem>>, vector<8x14xbf16>
    %cst_8 = arith.constant dense<0.000000e+00> : vector<8x1024xf32>
    %10 = tpu.matmul %9, %8, %cst_8 {dimension_numbers = #tpu.dot_dimension_numbers<[1], [0], [0], [1], [0, 0, 1, 1], [], []>} : vector<8x14xbf16>, vector<14x1024xbf16>, vector<8x1024xf32> -> vector<8x1024xf32>
    %c0_9 = arith.constant 0 : index
    %c0_10 = arith.constant 0 : index
    %11 = vector.load %arg5[%c0_9, %c0_10] : memref<8x1xf32, #tpu.memory_space<vmem>>, vector<8x1xf32>
    %12 = vector.broadcast %11 : vector<8x1xf32> to vector<8x1024xf32>
    %13 = arith.addf %10, %12 : vector<8x1024xf32>
    %cst_11 = arith.constant 0.000000e+00 : f32
    %14 = vector.broadcast %cst_11 : f32 to vector<8x1024xf32>
    %15 = arith.maximumf %13, %14 : vector<8x1024xf32>
    %16 = arith.truncf %15 : vector<8x1024xf32> to vector<8x1024xbf16>
    %c0_12 = arith.constant 0 : index
    %c0_13 = arith.constant 0 : index
    %17 = vector.load %arg6[%c0_12, %c0_13] : memref<5x8xbf16, #tpu.memory_space<vmem>>, vector<5x8xbf16>
    %cst_14 = arith.constant dense<0.000000e+00> : vector<5x1024xf32>
    %18 = tpu.matmul %17, %16, %cst_14 {dimension_numbers = #tpu.dot_dimension_numbers<[1], [0], [0], [1], [0, 0, 1, 1], [], []>} : vector<5x8xbf16>, vector<8x1024xbf16>, vector<5x1024xf32> -> vector<5x1024xf32>
    %c0_15 = arith.constant 0 : index
    %c0_16 = arith.constant 0 : index
    %19 = vector.load %arg7[%c0_15, %c0_16] : memref<5x1xf32, #tpu.memory_space<vmem>>, vector<5x1xf32>
    %20 = vector.broadcast %19 : vector<5x1xf32> to vector<5x1024xf32>
    %21 = arith.addf %18, %20 : vector<5x1024xf32>
    %c0_17 = arith.constant 0 : index
    %c0_18 = arith.constant 0 : index
    %22 = vector.load %arg8[%c0_17, %c0_18] : memref<5x1024xf32, #tpu.memory_space<vmem>>, vector<5x1024xf32>
    tpu.vector_store %arg8[%c0_17, %c0_18], %21 {strides = array<i32>} : memref<5x1024xf32, #tpu.memory_space<vmem>>, vector<5x1024xf32>,
    return
  }
  func.func @transform_0(%arg0: i32) -> (i32, i32) {
    %c0_i32 = arith.constant 0 : i32
    %c0_i32_0 = arith.constant 0 : i32
    return %c0_i32, %arg0 : i32, i32
  }
  func.func @transform_1(%arg0: i32) -> (i32, i32) {
    %c0_i32 = arith.constant 0 : i32
    %c0_i32_0 = arith.constant 0 : i32
    %c0_i32_1 = arith.constant 0 : i32
    return %c0_i32, %c0_i32_0 : i32, i32
  }
  func.func @transform_2(%arg0: i32) -> (i32, i32) {
    %c0_i32 = arith.constant 0 : i32
    %c0_i32_0 = arith.constant 0 : i32
    %c0_i32_1 = arith.constant 0 : i32
    return %c0_i32, %c0_i32_0 : i32, i32
  }
  func.func @transform_3(%arg0: i32) -> (i32, i32) {
    %c0_i32 = arith.constant 0 : i32
    %c0_i32_0 = arith.constant 0 : i32
    %c0_i32_1 = arith.constant 0 : i32
    return %c0_i32, %c0_i32_0 : i32, i32
  }
  func.func @transform_4(%arg0: i32) -> (i32, i32) {
    %c0_i32 = arith.constant 0 : i32
    %c0_i32_0 = arith.constant 0 : i32
    %c0_i32_1 = arith.constant 0 : i32
    return %c0_i32, %c0_i32_0 : i32, i32
  }
  func.func @transform_5(%arg0: i32) -> (i32, i32) {
    %c0_i32 = arith.constant 0 : i32
    %c0_i32_0 = arith.constant 0 : i32
    %c0_i32_1 = arith.constant 0 : i32
    return %c0_i32, %c0_i32_0 : i32, i32
  }
  func.func @transform_6(%arg0: i32) -> (i32, i32) {
    %c0_i32 = arith.constant 0 : i32
    %c0_i32_0 = arith.constant 0 : i32
    %c0_i32_1 = arith.constant 0 : i32
    return %c0_i32, %c0_i32_0 : i32, i32
  }
  func.func @transform_7(%arg0: i32) -> (i32, i32) {
    %c0_i32 = arith.constant 0 : i32
    %c0_i32_0 = arith.constant 0 : i32
    return %c0_i32, %arg0 : i32, i32
  }
}

</mosaic_0001>

<bundles_post_ra>
// kernel: tpu_custom_call.1
= control target key start
LH: loop header
LB: loop body
LE: loop exit
PB: predicated region body
PF: predicated region fallthrough
CT: control target
= control target key end

     0   :  { %12 = vsyncpa [#allocation3], 0  ;;  %s1545_s0 = inlined_call_operand.hbm [shape: bf16[16,4096], index: 0, kind: input, shape index: {}]   ;;  %s1546_s1 = inlined_call_operand.vmem [shape: bf16[14,16], index: 1, kind: input, shape index: {}]   ;;  %s1547_s2 = inlined_call_operand.vmem [shape: f32[14,1], index: 2, kind: input, shape index: {}]   ;;  %s1548_s3 = inlined_call_operand.vmem [shape: bf16[8,14], index: 3, kind: input, shape index: {}]   ;;  %s1549_s4 = inlined_call_operand.vmem [shape: f32[8,1], index: 4, kind: input, shape index: {}]   ;;  %s1550_s5 = inlined_call_operand.vmem [shape: bf16[5,8], index: 5, kind: input, shape index: {}]   ;;  %s1551_s6 = inlined_call_operand.vmem [shape: f32[5,1], index: 6, kind: input, shape index: {}]   ;;  %s1552_s7 = inlined_call_operand.hbm [shape: f32[5,4096], index: 7, kind: output, shape index: {}]  }
   0x1   :  { %14 = vsyncpa [#allocation3 + $0x1], 0 }
   0x2   :  { %15 = vsyncpa [#allocation4], 0 }
   0x3   :  { %17 = vsyncpa [#allocation4 + $0x1], 0  ;;  %s1318_s24 = smov 0   ;;  %s1320_s25 = smov 0  }
   0x4   :  { %s1322_s26 = smov 0   ;;  %s1324_s27 = smov 0  }
   0x5 LB: > { %s1339_s28 = sadd.s32 4294967295, %s1270_s27   ;;  %s1076_s29 = sadd.s32 4294967294, %s1270_s27   ;;  %s1270_s27 = sphi %s1324_s27, %s1565_s27   ;;  %s1266_s26 = sphi %s1322_s26, %s1564_s26   ;;  %s1262_s25 = sphi %s1320_s25, %s1563_s25   ;;  %s1258_s24 = sphi %s1318_s24, %s1562_s24  }
   0x6   : > { %s1343_s30 = sadd.s32 1, %s1270_s27   ;;  %s30_s8 = sadd.s32 1, %s1266_s26 }
   0x7   : > { %s27_s9 = ssub.s32 %s1270_s27, %s1343_s30  ;;  %p37_p0 = scmp.ne.s32.totalorder %s1266_s26, %s1262_s25 }
   0x8   : > { %p28_p1 = scmp.eq.s32.totalorder %s27_s9, 0  ;;  %p38_p2 = scmp.eq.s32.totalorder %s1270_s27, 0 }
   0x9   : > { %p43_p3 = scmp.ne.s32.totalorder %s1262_s25, %s1258_s24  ;;  %p44_p4 = scmp.eq.s32.totalorder %s1339_s28, 0 }
   0xa   : > { %s1355_s10 = scalar_select %p28_p1, %s1266_s26, %s30_s8  }
   0xb   : > { %p1357_p5 = por %p38_p2, %p37_p0  ;;  %p1361_p6 = por %p44_p4, %p43_p3 }
   0xc   : > { %p193_p7 = scmp.eq.s32.totalorder %s1339_s28, 3  ;;  %p199_p8 = scmp.eq.s32.totalorder %s1076_s29, 3 }
   0xd   : > { %p1133_p9 = scmp.lt.s32.totalorder %s1270_s27, 4  ;;  %s237_s15 = sand.u32 1, %s1266_s26  }
   0xe   : > { %p1367_p10 = por %p193_p7, %p37_p0  ;;  %p1371_p11 = por %p199_p8, %p43_p3 }
   0xf   : > { %s1119_s16 = sshll.u32 %s1270_s27, 9  ;;  %s1079_s17 = sshll.u32 %s237_s15, 6 }
  0x10   : > { %s1556_s13 = scalar_select %p1367_p10, 1, 0 }
  0x11   : > { %s1557_s14 = scalar_select %p1371_p11, 1, 0 }
  0x12   : > { %s1380_s20 = scalar_lea.hbm %s1545_s0, %s1119_s16  ;;  %s241_s21 = scalar_lea.vmem [#allocation2], %s1079_s17 }
  0x13   : > { %s248_s22 = sshll.u32 %s241_s21, 4  ;;  %p1384_p12 = pnand %p1133_p9, %p1357_p5  ;;  %s1388_s22 = int_to_ptr.vmem [resolvable:$true] %s248_s22 }
  0x14   : > { %s1391_s29 = scalar_lea.sflag [#allocation3], %s237_s15  ;;  %s1174_s8 = scalar_lea.hbm %s1380_s20, 1024 }
  0x15   : > { %p1175_p0 = scmp.ne.s32.totalorder %s1380_s20, %s1174_s8  ;;  %p1176_p1 = pneg %p1384_p12 }
  0x16   : > { %s1179_s16 = scalar_lea.hbm %s1545_s0, 4096  ;;  %p1180_p4 = scmp.lt.u32.totalorder %s1380_s20, %s1545_s0 }
  0x17   : > { %p1177_p2 = pnand %p1176_p1, %p1175_p0  ;;  %p1181_p5 = scmp.lt.u32.totalorder %s1179_s16, %s1174_s8 }
  0x18   : > { %p1183_p8 = scmp.lt.u32.totalorder %s1174_s8, %s1380_s20 }
  0x19   : > { %p1178_p3 = pneg %p1177_p2  ;;  %p1182_p7 = por %p1181_p5, %p1180_p4 }
  0x1b   : > { %p1184_p9 = por %p1183_p8, %p1182_p7 }
  0x1d   : > { %p1185_p13 = pnand %p1184_p9, %p1178_p3 }
  0x1f   : > { %1188 = shalt.err (!%p1185_p13)
}
  0x20   : > { %s1189_s15 = scalar_lea.vmem %s1388_s22, 1024  ;;  %s1272_s19 = smov [#allocation2]  }
  0x21   : > { %p1190_p0 = scmp.ne.s32.totalorder %s1388_s22, %s1189_s15  ;;  %s1194_s21 = sshll.u32 %s1272_s19, 4  ;;  %s1195_s21 = int_to_ptr.vmem [resolvable:$false] %s1194_s21 }
  0x22   : > { %s1196_s9 = scalar_lea.vmem %s1195_s21, 2048  ;;  %p1197_p10 = scmp.lt.s32.totalorder %s1388_s22, %s1195_s21 }
  0x23   : > { %p1192_p2 = pnand %p1190_p0, %p1176_p1  ;;  %p1198_p4 = scmp.lt.s32.totalorder %s1196_s9, %s1189_s15 }
  0x25   : > { %p1193_p11 = pneg %p1192_p2  ;;  %p1199_p5 = por %p1198_p4, %p1197_p10 }
  0x27   : > { %p1200_p7 = pnand %p1199_p5, %p1193_p11 }
  0x29   : > { %1203 = shalt.err (!%p1200_p7)
}
  0x2a   : > { %s1273_s8 = smov 2048   ;;  %s1274_s11 = smov 512  }
  0x2b   : > { %s1275_s16 = smov 32   ;;  %p256_p13 = scmp.lt.s32.totalorder %s1270_s27, 5 }
  0x2c   : > { %1128 = dma.hbm_to_vmem [thread:$0]  (!%p1384_p12), %s1380_s20, 1024, %s1388_s22, %s1391_s29, %s1273_s8, %s1274_s11, %s1275_s16  }
  0x2d   : > { %p1559_p1 = scmp.ge.s32.totalorder %s1270_s27, 1 }
  0x2f   : > { %p257_p3 = pnand %p1559_p1, %p256_p13 }
  0x30   : > { %s1423_s17 = sand.u32 (!%p257_p3), 1, %s1262_s25  }
  0x31   : > { %260 = sbr.rel (%p257_p3) target bundleno = 750 (0x2ee), region = 48  ;;  %s1083_s18 = sshll.u32 (!%p257_p3), %s1423_s17, 6 }
  0x32   : > { %s263_s15 = scalar_lea.sflag (!%p257_p3), [#allocation3], %s1423_s17  ;;  %s266_s19 = scalar_lea.vmem (!%p257_p3), [#allocation2], %s1083_s18 }
  0x38   : > { %1249 = dma.done.wait (%p1361_p6), %s263_s15, 1024  }
  0x39   : > { %1251 = vsyncadd (%p1361_p6), %s263_s15, 4294966272  ;;  %v1276_v0 = vmov 0   ;;  %v300_v1 = vld [vmem:[%s266_s19] sm:$0xff]  ;;  %v301_v3 = vld [vmem:[%s266_s19 + $0x8] sm:$0xff]  ;;  %vm367_vm0 = vcmask 130048   ;;  %vm578_vm1 = vcmask 1046528  }
  0x3a   : > { %403 = vmatprep.mubr.bf16.mxu0 %v1276_v0  ;;  %446 = vmatprep.mubr.bf16.mxu1 %v1276_v0  ;;  %v304_v2 = vld [vmem:[%s266_s19 + $0x20] sm:$0xff]  ;;  %v305_v5 = vld [vmem:[%s266_s19 + $0x28] sm:$0xff]  ;;  %v302_v10 = vld [vmem:[%s266_s19 + $0x10] sm:$0xff]  ;;  %vm574_vm2 = vcmask 113664   ;;  %vm794_vm3 = vcmask 1043456   ;;  %vm790_vm4 = vcmask 64512  }
  0x3b   : > { %1171 = vset.pattern.permute.xlu0 %v1276_v0  ;;  %1172 = vset.pattern.permute.xlu1 %v1276_v0  ;;  %v1087_v4 = vcombine.high %v300_v1, %v304_v2  ;;  %v1086_v6 = vcombine.low %v300_v1, %v304_v2  ;;  %v1089_v7 = vcombine.high %v301_v3, %v305_v5  ;;  %v1173_v9 = vld [vmem:[%s1546_s1] sm:$0x7f]   ;;  %v306_v11 = vld [vmem:[%s266_s19 + $0x30] sm:$0xff]  ;;  %v303_v13 = vld [vmem:[%s266_s19 + $0x18] sm:$0xff]  ;;  %s296_s22 = scalar_lea.vmem [#allocation5], %s1083_s18  ;;  %s1120_s23 = sshll.u32 %s1339_s28, 10 }
  0x3c   : > { %v1088_v8 = vcombine.low %v301_v3, %v305_v5  ;;  %v1091_v12 = vcombine.high %v302_v10, %v306_v11  ;;  %v307_v14 = vld [vmem:[%s266_s19 + $0x38] sm:$0xff]  ;;  %v310_v15 = vld [vmem:[%s1547_s2] sm:$0xff]  ;;  %v1090_v16 = vcombine.low %v302_v10, %v306_v11  ;;  %v311_v19 = vld [vmem:[%s1547_s2 + $0x8] sm:$0x3f]  ;;  %s1006_s29 = sshll.u32 %s296_s22, 4  ;;  %s1502_s9 = scalar_lea.hbm %s1552_s7, %s1120_s23  ;;  %s1504_s29 = int_to_ptr.vmem [resolvable:$true] %s1006_s29 }
  0x3d   : > { %371 = vmatprep.subr.bf16.mxu0 %v1087_v4  ;;  %414 = vmatprep.subr.bf16.mxu1 %v1089_v7  ;;  %v1093_v17 = vcombine.high %v303_v13, %v307_v14  ;;  %v1092_v18 = vcombine.low %v303_v13, %v307_v14  ;;  %v568_v20 = vld [vmem:[%s1549_s4] sm:$0xff]  ;;  %s992_s28 = scalar_lea.sflag [#allocation4], %s1423_s17  ;;  %s1204_s8 = scalar_lea.vmem %s1504_s29, 1024 }
  0x3e   : > { %372 = vmatpush1.bf16.msra.mxu0 %v1086_v6  ;;  %415 = vmatpush1.bf16.msra.mxu1 %v1088_v8  ;;  %v784_v21 = vld [vmem:[%s1551_s6] sm:$0x1f]  ;;  %p1205_p6 = scmp.ne.s32.totalorder %s1504_s29, %s1204_s8  ;;  %p1560_p10 = scmp.ne.s32.totalorder %s1556_s13, 0 }
  0x3f   : > { %457 = vmatprep.subr.bf16.mxu0 %v1091_v12  ;;  %500 = vmatprep.subr.bf16.mxu1 %v1093_v17  ;;  %v567_v3 = vld [vmem:[%s1548_s3] sm:$0xf]  ;;  %s1277_s11 = smov [#allocation5]  }
  0x40   : > { %314 = vperm.xlu0 %1171, %v310_v15   ;;  %571 = vperm.xlu1 %1172, %v568_v20   ;;  %p1206_p11 = pnand %p1205_p6, %p1560_p10  ;;  %s1208_s16 = sshll.u32 %s1277_s11, 4  ;;  %s1209_s16 = int_to_ptr.vmem [resolvable:$false] %s1208_s16 }
  0x41   : > { %1094 = vmatmul.mubr.msk.bf16.vlgmr.msra.gmra.mrb[0].mxu0 %vm367_vm0, %v1173_v9  ;;  %1095 = vmatmul.mubr.msk.bf16.vlgmr.msra.gmra.mrb[0].mxu1 %vm367_vm0, %v1173_v9  ;;  %s1210_s15 = scalar_lea.vmem %s1209_s16, 2048  ;;  %p1211_p8 = scmp.lt.s32.totalorder %s1504_s29, %s1209_s16 }
  0x42   : > { %458 = vmatpush1.bf16.msra.mxu0 %v1090_v16  ;;  %501 = vmatpush1.bf16.msra.mxu1 %v1092_v18  ;;  %p1207_p12 = pneg %p1206_p11  ;;  %p1212_p9 = scmp.lt.s32.totalorder %s1210_s15, %s1204_s8 }
  0x43   : > { %489 = vmatprep.mubr.bf16.mxu0 %v1276_v0  ;;  %532 = vmatprep.mubr.bf16.mxu1 %v1276_v0 }
  0x44   : > { %319 = vperm.xlu0 %1171, %v311_v19   ;;  %787 = vperm.xlu1 %1172, %v784_v21   ;;  %p1213_p0 = por %p1212_p9, %p1211_p8 }
  0x46   : > { %p1214_p2 = pnand %p1213_p0, %p1207_p12 }
  0x49   : > { %1096 = vmatmul.mubr.msk.bf16.vlgmr.msra.gmra.mrb[4].mxu0 %vm367_vm0, %v1173_v9  ;;  %1097 = vmatmul.mubr.msk.bf16.vlgmr.msra.gmra.mrb[4].mxu1 %vm367_vm0, %v1173_v9 }
  0x4a   : > { %635 = vmatprep.mubr.bf16.mxu0 %v1276_v0  ;;  %676 = vmatprep.mubr.bf16.mxu1 %v1276_v0 }
  0xbf   : > { %v315_v22 = vpop.permute.xlu0 %314 }
  0xc3   : > { %v320_v23 = vpop.permute.xlu0 %319 }
 0x114   : > { %v405_v24 = vpop.f32.mrb[0].mxu0  ;;  %v448_v26 = vpop.f32.mrb[0].mxu1 }
 0x115   : > { %v406_v25 = vadd.f32 %v405_v24, %v315_v22  ;;  %v407_v27 = vpop.f32.mrb[1].mxu0  ;;  %v449_v28 = vadd.f32 %v448_v26, %v315_v22  ;;  %v450_v30 = vpop.f32.mrb[1].mxu1 }
 0x116   : > { %v408_v29 = vadd.f32 %v407_v27, %v315_v22  ;;  %v409_v31 = vpop.f32.mrb[2].mxu0  ;;  %v451_v32 = vadd.f32 %v450_v30, %v315_v22  ;;  %v452_v34 = vpop.f32.mrb[2].mxu1 }
 0x117   : > { %v410_v33 = vadd.f32 %v409_v31, %v320_v23  ;;  %v411_v35 = vpop.f32.mrb[3].mxu0  ;;  %v453_v36 = vadd.f32 %v452_v34, %v320_v23  ;;  %v454_v38 = vpop.f32.mrb[3].mxu1  ;;  %v543_v39 = vmax.f32 %v406_v25, 0.0  ;;  %v545_v42 = vmax.f32 %v449_v28, 0.0 }
 0x118   : > { %v412_v37 = vadd.f32 %v411_v35, %v320_v23  ;;  %v455_v41 = vadd.f32 %v454_v38, %v320_v23  ;;  %v544_v43 = vmax.f32 %v408_v29, 0.0  ;;  %v546_v46 = vmax.f32 %v451_v32, 0.0 }
 0x119   : > { %v551_v40 = vmax.f32 %v410_v33, 0.0  ;;  %v553_v44 = vmax.f32 %v453_v36, 0.0 }
 0x11a   : > { %v552_v45 = vmax.f32 %v412_v37, 0.0  ;;  %v554_v48 = vmax.f32 %v455_v41, 0.0 }
 0x11b   : > { %v559_v47 = vpack.c.bf16 %v551_v40, %v543_v39  ;;  %v561_v49 = vpack.c.bf16 %v553_v44, %v545_v42 }
 0x11c   : > { %v560_v50 = vpack.c.bf16 %v552_v45, %v544_v43  ;;  %v491_v51 = vpop.f32.mrb[4].mxu0  ;;  %v562_v52 = vpack.c.bf16 %v554_v48, %v546_v46  ;;  %v534_v54 = vpop.f32.mrb[4].mxu1 }
 0x11d   : > { %v492_v53 = vadd.f32 %v491_v51, %v315_v22  ;;  %v493_v55 = vpop.f32.mrb[5].mxu0  ;;  %v580_v56 = vsel %vm578_vm1, %v559_v47, 0  ;;  %v535_v57 = vadd.f32 %v534_v54, %v315_v22  ;;  %v536_v59 = vpop.f32.mrb[5].mxu1  ;;  %v586_v61 = vsel %vm578_vm1, %v561_v49, 0  ;;  %v783_v49 = vld [vmem:[%s1550_s5] sm:$0x7] }
 0x11e   : > { %v494_v58 = vadd.f32 %v493_v55, %v315_v22  ;;  %v495_v60 = vpop.f32.mrb[6].mxu0  ;;  %1098 = vmatprep.subr.msk.bf16.mxu0 %vm578_vm1, %v560_v50  ;;  %v537_v62 = vadd.f32 %v536_v59, %v315_v22  ;;  %v538_v1 = vpop.f32.mrb[6].mxu1  ;;  %1100 = vmatprep.subr.msk.bf16.mxu1 %vm578_vm1, %v562_v52 }
 0x11f   : > { %v496_v63 = vadd.f32 %v495_v60, %v320_v23  ;;  %v497_v2 = vpop.f32.mrb[7].mxu0  ;;  %604 = vmatpush1.bf16.msra.mxu0 %v580_v56  ;;  %v539_v4 = vadd.f32 %v538_v1, %v320_v23  ;;  %v540_v6 = vpop.f32.mrb[7].mxu1  ;;  %645 = vmatpush1.bf16.msra.mxu1 %v586_v61  ;;  %v547_v7 = vmax.f32 %v492_v53, 0.0  ;;  %v549_v10 = vmax.f32 %v535_v57, 0.0 }
 0x120   : > { %v498_v5 = vadd.f32 %v497_v2, %v320_v23  ;;  %v541_v9 = vadd.f32 %v540_v6, %v320_v23  ;;  %v548_v11 = vmax.f32 %v494_v58, 0.0  ;;  %v550_v14 = vmax.f32 %v537_v62, 0.0  ;;  %v572_v22 = vpop.permute.xlu1 %571 }
 0x121   : > { %v555_v8 = vmax.f32 %v496_v63, 0.0  ;;  %v557_v12 = vmax.f32 %v539_v4, 0.0 }
 0x122   : > { %v556_v13 = vmax.f32 %v498_v5, 0.0  ;;  %1099 = vmatmul.mubr.msk.bf16.vlgmr.msra.gmra.mrb[8].mxu0 %vm574_vm2, %v567_v3  ;;  %v558_v16 = vmax.f32 %v541_v9, 0.0  ;;  %1101 = vmatmul.mubr.msk.bf16.vlgmr.msra.gmra.mrb[8].mxu1 %vm574_vm2, %v567_v3 }
 0x123   : > { %v563_v15 = vpack.c.bf16 %v555_v8, %v547_v7  ;;  %717 = vmatprep.mubr.bf16.mxu0 %v1276_v0  ;;  %v565_v17 = vpack.c.bf16 %v557_v12, %v549_v10  ;;  %758 = vmatprep.mubr.bf16.mxu1 %v1276_v0 }
 0x124   : > { %v564_v18 = vpack.c.bf16 %v556_v13, %v548_v11  ;;  %v566_v19 = vpack.c.bf16 %v558_v16, %v550_v14  ;;  %v788_v5 = vpop.permute.xlu1 %787 }
 0x125   : > { %v592_v20 = vsel %vm578_vm1, %v563_v15, 0  ;;  %v598_v21 = vsel %vm578_vm1, %v565_v17, 0 }
 0x126   : > { %1102 = vmatprep.subr.msk.bf16.mxu0 %vm578_vm1, %v564_v18  ;;  %1104 = vmatprep.subr.msk.bf16.mxu1 %vm578_vm1, %v566_v19 }
 0x127   : > { %686 = vmatpush1.bf16.msra.mxu0 %v592_v20  ;;  %727 = vmatpush1.bf16.msra.mxu1 %v598_v21 }
 0x12a   : > { %1103 = vmatmul.mubr.msk.bf16.vlgmr.msra.gmra.mrb[12].mxu0 %vm574_vm2, %v567_v3  ;;  %1105 = vmatmul.mubr.msk.bf16.vlgmr.msra.gmra.mrb[12].mxu1 %vm574_vm2, %v567_v3 }
 0x12b   : > { %851 = vmatprep.mubr.bf16.mxu0 %v1276_v0  ;;  %892 = vmatprep.mubr.bf16.mxu1 %v1276_v0 }
 0x1f5   : > { %v637_v23 = vpop.f32.mrb[8].mxu0  ;;  %v678_v25 = vpop.f32.mrb[8].mxu1 }
 0x1f6   : > { %v638_v24 = vadd.f32 %v637_v23, %v572_v22  ;;  %v639_v26 = vpop.f32.mrb[9].mxu0  ;;  %v679_v27 = vadd.f32 %v678_v25, %v572_v22  ;;  %v680_v29 = vpop.f32.mrb[9].mxu1 }
 0x1f7   : > { %v640_v28 = vadd.f32 %v639_v26, %v572_v22  ;;  %v641_v30 = vpop.f32.mrb[10].mxu0  ;;  %v681_v32 = vadd.f32 %v680_v29, %v572_v22  ;;  %v682_v33 = vpop.f32.mrb[10].mxu1 }
 0x1f8   : > { %v767_v31 = vmax.f32 %v638_v24, 0.0  ;;  %v642_v34 = vpop.f32.mrb[11].mxu0  ;;  %v769_v35 = vmax.f32 %v679_v27, 0.0  ;;  %v683_v37 = vpop.f32.mrb[11].mxu1 }
 0x1f9   : > { %v768_v36 = vmax.f32 %v640_v28, 0.0  ;;  %v770_v39 = vmax.f32 %v681_v32, 0.0 }
 0x1fa   : > { %v775_v38 = vpack.c.bf16 %v767_v31, %v767_v31  ;;  %v777_v40 = vpack.c.bf16 %v769_v35, %v769_v35 }
 0x1fb   : > { %v776_v41 = vpack.c.bf16 %v768_v36, %v768_v36  ;;  %v778_v42 = vpack.c.bf16 %v770_v39, %v770_v39 }
 0x1fc   : > { %v796_v43 = vsel %vm794_vm3, %v775_v38, 0  ;;  %v802_v45 = vsel %vm794_vm3, %v777_v40, 0 }
 0x1fd   : > { %v719_v44 = vpop.f32.mrb[12].mxu0  ;;  %1106 = vmatprep.subr.msk.bf16.mxu0 %vm794_vm3, %v776_v41  ;;  %v760_v47 = vpop.f32.mrb[12].mxu1  ;;  %1108 = vmatprep.subr.msk.bf16.mxu1 %vm794_vm3, %v778_v42 }
 0x1fe   : > { %v720_v46 = vadd.f32 %v719_v44, %v572_v22  ;;  %v721_v48 = vpop.f32.mrb[13].mxu0  ;;  %820 = vmatpush1.bf16.msra.mxu0 %v796_v43  ;;  %v761_v50 = vadd.f32 %v760_v47, %v572_v22  ;;  %v762_v52 = vpop.f32.mrb[13].mxu1  ;;  %861 = vmatpush1.bf16.msra.mxu1 %v802_v45 }
 0x1ff   : > { %v722_v51 = vadd.f32 %v721_v48, %v572_v22  ;;  %v723_v53 = vpop.f32.mrb[14].mxu0  ;;  %v763_v55 = vadd.f32 %v762_v52, %v572_v22  ;;  %v764_v56 = vpop.f32.mrb[14].mxu1 }
 0x200   : > { %v771_v54 = vmax.f32 %v720_v46, 0.0  ;;  %v724_v57 = vpop.f32.mrb[15].mxu0  ;;  %v773_v58 = vmax.f32 %v761_v50, 0.0  ;;  %v765_v60 = vpop.f32.mrb[15].mxu1 }
 0x201   : > { %v772_v59 = vmax.f32 %v722_v51, 0.0  ;;  %1107 = vmatmul.mubr.msk.bf16.vlgmr.msra.gmra.mrb[16].mxu0 %vm790_vm4, %v783_v49  ;;  %v774_v62 = vmax.f32 %v763_v55, 0.0  ;;  %1109 = vmatmul.mubr.msk.bf16.vlgmr.msra.gmra.mrb[16].mxu1 %vm790_vm4, %v783_v49 }
 0x202   : > { %v779_v61 = vpack.c.bf16 %v771_v54, %v771_v54  ;;  %933 = vmatprep.mubr.bf16.mxu0 %v1276_v0  ;;  %v781_v63 = vpack.c.bf16 %v773_v58, %v773_v58  ;;  %974 = vmatprep.mubr.bf16.mxu1 %v1276_v0 }
 0x203   : > { %v780_v1 = vpack.c.bf16 %v772_v59, %v772_v59  ;;  %v782_v2 = vpack.c.bf16 %v774_v62, %v774_v62 }
 0x204   : > { %v808_v3 = vsel %vm794_vm3, %v779_v61, 0  ;;  %v814_v4 = vsel %vm794_vm3, %v781_v63, 0 }
 0x205   : > { %1110 = vmatprep.subr.msk.bf16.mxu0 %vm794_vm3, %v780_v1  ;;  %1112 = vmatprep.subr.msk.bf16.mxu1 %vm794_vm3, %v782_v2 }
 0x206   : > { %902 = vmatpush1.bf16.msra.mxu0 %v808_v3  ;;  %943 = vmatpush1.bf16.msra.mxu1 %v814_v4 }
 0x209   : > { %1111 = vmatmul.mubr.msk.bf16.vlgmr.msra.gmra.mrb[20].mxu0 %vm790_vm4, %v783_v49  ;;  %1113 = vmatmul.mubr.msk.bf16.vlgmr.msra.gmra.mrb[20].mxu1 %vm790_vm4, %v783_v49 }
 0x2d4   : > { %v853_v6 = vpop.f32.mrb[16].mxu0  ;;  %v894_v0 = vpop.f32.mrb[16].mxu1 }
 0x2d5   : > { %v854_v7 = vadd.f32 %v853_v6, %v788_v5  ;;  %v855_v8 = vpop.f32.mrb[17].mxu0  ;;  %v895_v9 = vadd.f32 %v894_v0, %v788_v5  ;;  %v896_v11 = vpop.f32.mrb[17].mxu1 }
 0x2d6   : > { %v856_v10 = vadd.f32 %v855_v8, %v788_v5  ;;  %v857_v12 = vpop.f32.mrb[18].mxu0  ;;  %v897_v13 = vadd.f32 %v896_v11, %v788_v5  ;;  %v898_v14 = vpop.f32.mrb[18].mxu1 }
 0x2d7   : > { %983 = vst [vmem:[%s296_s22] sm:$0x1f] %v854_v7  ;;  %v858_v15 = vpop.f32.mrb[19].mxu0  ;;  %985 = vst [vmem:[%s296_s22 + $0x10] sm:$0x1f] %v895_v9  ;;  %v899_v16 = vpop.f32.mrb[19].mxu1 }
 0x2d8   : > { %984 = vst [vmem:[%s296_s22 + $0x8] sm:$0x1f] %v856_v10  ;;  %986 = vst [vmem:[%s296_s22 + $0x18] sm:$0x1f] %v897_v13 }
 0x2dc   : > { %v935_v17 = vpop.f32.mrb[20].mxu0  ;;  %v976_v19 = vpop.f32.mrb[20].mxu1 }
 0x2dd   : > { %v936_v18 = vadd.f32 %v935_v17, %v788_v5  ;;  %v937_v20 = vpop.f32.mrb[21].mxu0  ;;  %v977_v21 = vadd.f32 %v976_v19, %v788_v5  ;;  %v978_v23 = vpop.f32.mrb[21].mxu1 }
 0x2de   : > { %v938_v22 = vadd.f32 %v937_v20, %v788_v5  ;;  %v939_v24 = vpop.f32.mrb[22].mxu0  ;;  %v979_v25 = vadd.f32 %v978_v23, %v788_v5  ;;  %v980_v26 = vpop.f32.mrb[22].mxu1 }
 0x2df   : > { %987 = vst [vmem:[%s296_s22 + $0x20] sm:$0x1f] %v936_v18  ;;  %v940_v27 = vpop.f32.mrb[23].mxu0  ;;  %989 = vst [vmem:[%s296_s22 + $0x30] sm:$0x1f] %v977_v21  ;;  %v981_v28 = vpop.f32.mrb[23].mxu1 }
 0x2e0   : > { %988 = vst [vmem:[%s296_s22 + $0x28] sm:$0x1f] %v938_v22  ;;  %990 = vst [vmem:[%s296_s22 + $0x38] sm:$0x1f] %v979_v25 }
 0x2e1   : > { %1217 = shalt.err (!%p1214_p2)
}
 0x2e2   : > { %s1218_s17 = scalar_lea.hbm %s1502_s9, 1024  ;;  %s1222_s12 = scalar_lea.hbm %s1552_s7, 4096 }
 0x2e3   : > { %p1219_p4 = scmp.ne.s32.totalorder %s1502_s9, %s1218_s17  ;;  %p1223_p13 = scmp.lt.u32.totalorder %s1502_s9, %s1552_s7 }
 0x2e4   : > { %p1224_p1 = scmp.lt.u32.totalorder %s1222_s12, %s1218_s17  ;;  %p1226_p6 = scmp.lt.u32.totalorder %s1218_s17, %s1502_s9 }
 0x2e5   : > { %p1220_p5 = pnand %p1219_p4, %p1560_p10 }
 0x2e6   : > { %p1225_p3 = por %p1224_p1, %p1223_p13 }
 0x2e7   : > { %p1221_p7 = pneg %p1220_p5 }
 0x2e8   : > { %p1227_p11 = por %p1226_p6, %p1225_p3 }
 0x2ea   : > { %p1228_p12 = pnand %p1227_p11, %p1221_p7 }
 0x2ec   : > { %1231 = shalt.err (!%p1228_p12)
}
 0x2ed   : > { %1123 = dma.vmem_to_hbm [thread:$0]  (%p1560_p10), %s1504_s29, 1024, %s1502_s9, %s992_s28  }
 0x2ee PF: > { %p1134_p8 = scmp.ge.s32.totalorder %s1270_s27, 2  ;;  %s1018_s18 = sand.u32 1, %s1258_s24  }
 0x2ef   : > { %p1561_p9 = scmp.ne.s32.totalorder %s1557_s14, 0  ;;  %s1019_s21 = scalar_lea.sflag [#allocation4], %s1018_s18 }
 0x2f1   : > { %p1130_p0 = pnand %p1134_p8, %p1561_p9 }
 0x2f3   : > { %1253 = dma.done.wait (!%p1130_p0), %s1019_s21, 1024  }
 0x2f4   : > { %1255 = vsyncadd (!%p1130_p0), %s1019_s21, 4294966272  ;;  %p20_p2 = scmp.ge.s32.totalorder %s1343_s30, 6   ;;  %s1562_s24 = smov %s1262_s25 }
 0x2f5   : > { %s1563_s25 = smov %s1266_s26  ;;  %s1564_s26 = smov %s1355_s10 }
 0x2f6   : > { %s1565_s27 = smov %s1343_s30  ;;  %22 = sbr.rel (!%p20_p2) target bundleno = 5 (0x5), region = 93 }
 0x2fd   :  { %1024 = vsyncpa [#allocation3], 1 }
 0x2fe   :  { %1026 = vsyncpa [#allocation3 + $0x1], 1 }
 0x2ff   :  { %1027 = vsyncpa [#allocation4], 1 }
 0x300   :  { %1029 = vsyncpa [#allocation4 + $0x1], 1 }

</bundles_post_ra>
